<compile_context>
chip_gen: v5e
topology: v5e:2x2
jax: 0.10.0
libtpu: 0.0.40
codegen_flags: <defaults>
</compile_context>

<pallas_src>
import functools

import jax
import jax.numpy as jnp
from jax.experimental import pallas as pl
from jax.experimental.pallas import tpu as pltpu


def _smooth_max_pool_kernel(x_ref, sel_ref, o_ref, *, kernel_size, stride,
                            width, out_h, out_w, temperature):
    """One grid step: block x_ref (T, G, stride*W) -> o_ref (T, OH, OW).

    Numerics: T * logsumexp(x / T) == m + T * log(sum(exp((x - m) / T))) with
    m the per-window max (stable even at T=0.01).
    """
    K, s, W, OH, OW = kernel_size, stride, width, out_h, out_w
    T = o_ref.shape[0]
    temp = float(temperature)
    inv_t = 1.0 / temp

    # ---- load each of the K window rows exactly once (hoisted; review #6) ----
    # Row h = oh*s + ki lives at (group h//s, lanes (h%s)*W + w) in the
    # regrouped block, so each load is a plain unit-stride sub-block read.
    rows = []
    for ki in range(K):
        d, p = divmod(ki, s)
        rows.append(x_ref[:, pl.ds(d, OH), pl.ds(p * W, W)].astype(jnp.float32))

    # ---- pool over the K window rows: purely elementwise, full lane width ----
    m_h = rows[0]
    for r in rows[1:]:
        m_h = jnp.maximum(m_h, r)
    s_h = jnp.exp((rows[0] - m_h) * inv_t)
    for r in rows[1:]:
        s_h = s_h + jnp.exp((r - m_h) * inv_t)

    # ---- pool over the K window columns via XLU lane rolls (review #1) ----
    # Data for output column ow sits at lane ow*s + kj; roll(-kj) aligns it.
    # The input-width relation (OW-1)*s + K - 1 <= W - 1 guarantees the kept
    # lanes {ow*s} never read wrapped-around values.
    if K > 1:
        m_list = [m_h]
        s_list = [s_h]
        for kj in range(1, K):
            m_list.append(pltpu.roll(m_h, shift=W - kj, axis=2))
            s_list.append(pltpu.roll(s_h, shift=W - kj, axis=2))
        m_w = m_list[0]
        for m in m_list[1:]:
            m_w = jnp.maximum(m_w, m)
        s_w = jnp.zeros_like(s_h)
        for m, sv in zip(m_list, s_list):
            s_w = s_w + sv * jnp.exp((m - m_w) * inv_t)
    else:
        m_w, s_w = m_h, s_h

    # ---- fuse the two stats before compaction (review #3) ----
    y_w = m_w + temp * jnp.log(s_w)
    if K > 1:
        # Lanes > (OW-1)*s are dropped by the one-hot compaction but may hold
        # rolled-around / padding junk; force them finite so 0*junk != NaN.
        col_ok = jax.lax.broadcasted_iota(jnp.int32, (1, 1, W), 2) <= (OW - 1) * s
        y_w = jnp.where(col_ok, y_w, 0.0)

    # ---- compact lanes {ow*s} -> ow with ONE one-hot matmul on the MXU ----
    sel = sel_ref[...]                       # (W, OW) one-hot, precomputed (review #7)
    if OH % 8 == 0:
        # Sublane-aligned: collapsing (T, OH) <-> (T*OH) is a layout no-op, so a
        # single 2-D matmul replaces T tiny padded batched matmuls (review #4).
        y_flat = y_w.reshape(T * OH, W)
        out = jax.lax.dot(y_flat, sel,
                          precision=jax.lax.Precision.HIGHEST,
                          preferred_element_type=jnp.float32)
        o_ref[...] = out.reshape(T, OH, OW).astype(o_ref.dtype)
    else:
        # Non-aligned OH: keep the (known-good) batched form rather than rely on
        # a non-trivial in-kernel shape_cast.  sel is still shared & precomputed.
        sel_b = jnp.broadcast_to(sel, (T, W, OW))
        out = jnp.einsum("tow,twq->toq", y_w, sel_b,
                         precision=jax.lax.Precision.HIGHEST,
                         preferred_element_type=jnp.float32)
        o_ref[...] = out.astype(o_ref.dtype)


def _pick_tile(bc, per_slab_bytes, budget):
    """Largest divisor of bc fitting the byte budget.

    Keeps >= 2 grid steps and prefers an even number of grid steps so v7x's two
    TensorCores get balanced work (review #9).
    """
    best = 1
    best_even = None
    for t in range(1, bc + 1):
        if bc % t:
            continue
        if t * per_slab_bytes > budget:
            continue
        steps = bc // t
        if bc >= 2 and steps < 2:
            continue
        best = t
        if steps % 2 == 0:
            best_even = t
    return best_even if best_even is not None else best


def smooth_max_pool2d(x, kernel_size, stride, temperature=0.01):
    """x: (B, C, H, W). Returns (B, C, OH, OW). Matches the PyTorch module."""
    B, C, H, W = x.shape
    K, s = int(kernel_size), int(stride)
    OH = (H - K) // s + 1
    OW = (W - K) // s + 1
    assert OH >= 1 and OW >= 1, "pooling window does not fit"
    BC = B * C

    # Regroup rows by stride phase: (BC, H, W) -> (BC, G, s*W).  Row h = g*s+p
    # keeps its memory position, so when G*s == H this is metadata-only (no
    # HBM traffic) -- true for both demo configs below.
    G = (K - 1) // s + OH                 # row groups touched per slab
    Hn = G * s
    xr = x.reshape(BC, H, W)
    if Hn != H:
        # TODO(synk): handle ragged H (G*s != H) via index_map / in-kernel
        # clamping instead of this extra HBM copy (review #11); rows beyond the
        # last full group are never read by any valid window.
        if Hn < H:
            xr = xr[:, :Hn, :]
        else:
            xr = jnp.pad(xr, ((0, 0), (0, Hn - H), (0, 0)))
    xr = xr.reshape(BC, G, s * W)

    # Loop-invariant one-hot compaction matrix, built once in the wrapper.
    sel = (jnp.arange(W, dtype=jnp.int32)[:, None]
           == (jnp.arange(OW, dtype=jnp.int32) * s)[None, :]).astype(jnp.float32)

    # Generation-aware VMEM budgeting (review #8): 128 MiB on v5e/v6e, 64 MiB on
    # v7x -- derive both the per-step block budget and the scoped VMEM limit.
    try:
        vmem_cap = int(pltpu.get_tpu_info().vmem_capacity_bytes)
    except Exception:
        vmem_cap = 64 * 1024 * 1024
    budget = max(vmem_cap // 3, 4 * 1024 * 1024)
    vmem_limit = int(min(vmem_cap * 3 // 4, 96 * 1024 * 1024))

    # Per-slab footprint estimate (used only to size T): double-buffered input
    # block + hoisted f32 rows + rolled stats + double-buffered output block.
    per_slab = 2 * (G * s * W) * x.dtype.itemsize
    per_slab += (3 * K + 6) * OH * W * 4
    per_slab += W * OW * 4 + 4 * OH * OW * 4
    T = _pick_tile(BC, per_slab, budget)
    grid = (BC // T,)

    kernel = functools.partial(
        _smooth_max_pool_kernel,
        kernel_size=K, stride=s, width=W, out_h=OH, out_w=OW,
        temperature=float(temperature))

    out = pl.pallas_call(
        kernel,
        out_shape=jax.ShapeDtypeStruct((BC, OH, OW), x.dtype),
        grid=grid,
        in_specs=[
            pl.BlockSpec((T, G, s * W), lambda i: (i, 0, 0)),
            pl.BlockSpec((W, OW), lambda i: (0, 0)),      # shared, constant block
        ],
        out_specs=pl.BlockSpec((T, OH, OW), lambda i: (i, 0, 0)),
        compiler_params=pltpu.CompilerParams(
            dimension_semantics=("parallel",),
            vmem_limit_bytes=vmem_limit,
        ),
    )(xr, sel)

    return out.reshape(B, C, OH, OW)


def _reference(x, kernel_size, stride, temperature=0.01):
    """Pure-JAX reference mirroring the PyTorch forward."""
    B, C, H, W = x.shape
    K, s = kernel_size, stride
    OH = (H - K) // s + 1
    OW = (W - K) // s + 1
    cols = []
    for ki in range(K):
        for kj in range(K):
            sl = jax.lax.slice(
                x,
                (0, 0, ki, kj),
                (B, C, ki + (OH - 1) * s + 1, kj + (OW - 1) * s + 1),
                (1, 1, s, s),
            )
            cols.append(sl)
    unfolded = jnp.stack(cols, axis=-1)                      # (B, C, OH, OW, K*K)
    return jax.scipy.special.logsumexp(unfolded / temperature, axis=-1) * temperature


if __name__ == "__main__":
    key = jax.random.PRNGKey(0)
    B, C, H, W = 2, 4, 16, 16
    x = jax.random.normal(key, (B, C, H, W), dtype=jnp.float32)

    # Spec config: 2x2 window, stride 2, temperature 0.01 (exercises the 2-D
    # single-matmul compaction path, OH % 8 == 0).
    out = jax.block_until_ready(smooth_max_pool2d(x, 2, 2, 0.01))
    ref = _reference(x, 2, 2, 0.01)
    assert out.shape == ref.shape
    assert jnp.allclose(out, ref, atol=1e-4, rtol=1e-4), "mismatch (2,2)"

    # Overlapping-window config exercises the general roll path and the batched
    # compaction fallback (kernel 3, stride 2, OH = 7).
    out2 = jax.block_until_ready(smooth_max_pool2d(x, 3, 2, 0.01))
    ref2 = _reference(x, 3, 2, 0.01)
    assert out2.shape == ref2.shape
    assert jnp.allclose(out2, ref2, atol=1e-4, rtol=1e-4), "mismatch (3,2)"

    print("KERNEL_OK")
</pallas_src>

<mosaic_0001>
module attributes {stable_mosaic.version = 11 : i64} {
  func.func @_smooth_max_pool_kernel(%arg0: i32, %arg1: memref<4x8x32xf32, #tpu.memory_space<vmem>>, %arg2: memref<16x8xf32, #tpu.memory_space<vmem>>, %arg3: memref<4x8x8xf32, #tpu.memory_space<vmem>>) attributes {dimension_semantics = [#tpu.dimension_semantics<parallel>], iteration_bounds = array<i64: 2>, scalar_prefetch = 0 : i64, scratch_operands = 0 : i64, tpu.core_type = #tpu.core_type<tc>, window_params = [{transform_indices = @transform_0, window_bounds = array<i64: 4, 8, 32>}, {pipeline_mode = #tpu.pipeline_mode<synchronous>, transform_indices = @transform_1, window_bounds = array<i64: 16, 8>}, {transform_indices = @transform_2, window_bounds = array<i64: 4, 8, 8>}]} {
    %c0 = arith.constant 0 : index
    %c0_0 = arith.constant 0 : index
    %c0_1 = arith.constant 0 : index
    %0 = vector.load %arg1[%c0, %c0_0, %c0_1] : memref<4x8x32xf32, #tpu.memory_space<vmem>>, vector<4x8x16xf32>
    %c0_2 = arith.constant 0 : index
    %c0_3 = arith.constant 0 : index
    %c16 = arith.constant 16 : index
    %1 = vector.load %arg1[%c0_2, %c0_3, %c16] : memref<4x8x32xf32, #tpu.memory_space<vmem>>, vector<4x8x16xf32>
    %2 = arith.maximumf %0, %1 : vector<4x8x16xf32>
    %3 = arith.subf %0, %2 : vector<4x8x16xf32>
    %cst = arith.constant 1.000000e+02 : f32
    %4 = vector.broadcast %cst : f32 to vector<4x8x16xf32>
    %5 = arith.mulf %3, %4 : vector<4x8x16xf32>
    %6 = math.exp %5 : vector<4x8x16xf32>
    %7 = arith.subf %1, %2 : vector<4x8x16xf32>
    %cst_4 = arith.constant 1.000000e+02 : f32
    %8 = vector.broadcast %cst_4 : f32 to vector<4x8x16xf32>
    %9 = arith.mulf %7, %8 : vector<4x8x16xf32>
    %10 = math.exp %9 : vector<4x8x16xf32>
    %11 = arith.addf %6, %10 : vector<4x8x16xf32>
    %c15_i32 = arith.constant 15 : i32
    %12 = tpu.dynamic_rotate %2 by %c15_i32 dim 2 : vector<4x8x16xf32>, i32 -> vector<4x8x16xf32>
    %c15_i32_5 = arith.constant 15 : i32
    %13 = tpu.dynamic_rotate %11 by %c15_i32_5 dim 2 : vector<4x8x16xf32>, i32 -> vector<4x8x16xf32>
    %14 = arith.maximumf %2, %12 : vector<4x8x16xf32>
    %cst_6 = arith.constant 0.000000e+00 : f32
    %15 = vector.broadcast %cst_6 : f32 to vector<4x8x16xf32>
    %16 = arith.subf %2, %14 : vector<4x8x16xf32>
    %cst_7 = arith.constant 1.000000e+02 : f32
    %17 = vector.broadcast %cst_7 : f32 to vector<4x8x16xf32>
    %18 = arith.mulf %16, %17 : vector<4x8x16xf32>
    %19 = math.exp %18 : vector<4x8x16xf32>
    %20 = arith.mulf %11, %19 : vector<4x8x16xf32>
    %21 = arith.addf %15, %20 : vector<4x8x16xf32>
    %22 = arith.subf %12, %14 : vector<4x8x16xf32>
    %cst_8 = arith.constant 1.000000e+02 : f32
    %23 = vector.broadcast %cst_8 : f32 to vector<4x8x16xf32>
    %24 = arith.mulf %22, %23 : vector<4x8x16xf32>
    %25 = math.exp %24 : vector<4x8x16xf32>
    %26 = arith.mulf %13, %25 : vector<4x8x16xf32>
    %27 = arith.addf %21, %26 : vector<4x8x16xf32>
    %28 = math.log %27 : vector<4x8x16xf32>
    %cst_9 = arith.constant 0.00999999977 : f32
    %29 = vector.broadcast %cst_9 : f32 to vector<4x8x16xf32>
    %30 = arith.mulf %29, %28 : vector<4x8x16xf32>
    %31 = arith.addf %14, %30 : vector<4x8x16xf32>
    %32 = tpu.iota {dimensions = array<i32: 2>} : vector<1x1x16xi32>
    %c14_i32 = arith.constant 14 : i32
    %33 = vector.broadcast %c14_i32 : i32 to vector<1x1x16xi32>
    %34 = arith.cmpi sle, %32, %33 : vector<1x1x16xi32>
    %cst_10 = arith.constant 0.000000e+00 : f32
    %35 = vector.shape_cast %34 : vector<1x1x16xi1> to vector<1x1x16xi1>
    %36 = vector.broadcast %35 : vector<1x1x16xi1> to vector<4x8x16xi1>
    %37 = vector.broadcast %cst_10 : f32 to vector<4x8x16xf32>
    %38 = arith.select %36, %31, %37 : vector<4x8x16xi1>, vector<4x8x16xf32>
    %c0_11 = arith.constant 0 : index
    %c0_12 = arith.constant 0 : index
    %39 = vector.load %arg2[%c0_11, %c0_12] : memref<16x8xf32, #tpu.memory_space<vmem>>, vector<16x8xf32>
    %40 = vector.shape_cast %38 : vector<4x8x16xf32> to vector<32x16xf32>
    %cst_13 = arith.constant dense<0.000000e+00> : vector<32x8xf32>
    %41 = tpu.matmul %40, %39, %cst_13 {dimension_numbers = #tpu.dot_dimension_numbers<[1], [0], [0], [1], [0, 0, 1, 1], [], []>, precision = #tpu.contract_precision<fp32>} : vector<32x16xf32>, vector<16x8xf32>, vector<32x8xf32> -> vector<32x8xf32>
    %42 = vector.shape_cast %41 : vector<32x8xf32> to vector<4x8x8xf32>
    %c0_14 = arith.constant 0 : index
    %c0_15 = arith.constant 0 : index
    %c0_16 = arith.constant 0 : index
    %43 = vector.load %arg3[%c0_14, %c0_15, %c0_16] : memref<4x8x8xf32, #tpu.memory_space<vmem>>, vector<4x8x8xf32>
    tpu.vector_store %arg3[%c0_14, %c0_15, %c0_16], %42 {strides = array<i32>} : memref<4x8x8xf32, #tpu.memory_space<vmem>>, vector<4x8x8xf32>,
    return
  }
  func.func @transform_0(%arg0: i32) -> (i32, i32, i32) {
    %c0_i32 = arith.constant 0 : i32
    %c0_i32_0 = arith.constant 0 : i32
    %c0_i32_1 = arith.constant 0 : i32
    return %arg0, %c0_i32, %c0_i32_0 : i32, i32, i32
  }
  func.func @transform_1(%arg0: i32) -> (i32, i32) {
    %c0_i32 = arith.constant 0 : i32
    %c0_i32_0 = arith.constant 0 : i32
    %c0_i32_1 = arith.constant 0 : i32
    return %c0_i32, %c0_i32_0 : i32, i32
  }
  func.func @transform_2(%arg0: i32) -> (i32, i32, i32) {
    %c0_i32 = arith.constant 0 : i32
    %c0_i32_0 = arith.constant 0 : i32
    %c0_i32_1 = arith.constant 0 : i32
    return %arg0, %c0_i32, %c0_i32_0 : i32, i32, i32
  }
}

</mosaic_0001>

<bundles_post_ra>
// kernel: tpu_custom_call.1
= control target key start
LH: loop header
LB: loop body
LE: loop exit
PB: predicated region body
PF: predicated region fallthrough
CT: control target
= control target key end

     0   :  { %7 = vsyncpa [#allocation3], 0  ;;  %s1354_s0 = inlined_call_operand.hbm [shape: f32[8,8,32], index: 0, kind: input, shape index: {}]   ;;  %s1355_s1 = inlined_call_operand.vmem [shape: f32[16,8], index: 1, kind: input, shape index: {}]   ;;  %s1356_s2 = inlined_call_operand.hbm [shape: f32[8,8,8], index: 2, kind: output, shape index: {}]  }
   0x1   :  { %9 = vsyncpa [#allocation3 + $0x1], 0 }
   0x2   :  { %10 = vsyncpa [#allocation4], 0 }
   0x3   :  { %12 = vsyncpa [#allocation4 + $0x1], 0  ;;  %s1028_s9 = smov 0   ;;  %s1030_s10 = smov 0  }
   0x4   :  { %s1032_s11 = smov 0   ;;  %s1034_s12 = smov 0  }
   0x5 LB: > { %s1049_s13 = sadd.s32 4294967295, %s1003_s12   ;;  %s793_s14 = sadd.s32 4294967294, %s1003_s12   ;;  %s1003_s12 = sphi %s1034_s12, %s1366_s12   ;;  %s999_s11 = sphi %s1032_s11, %s1365_s11   ;;  %s995_s10 = sphi %s1030_s10, %s1364_s10   ;;  %s991_s9 = sphi %s1028_s9, %s1363_s9  }
   0x6   : > { %s1053_s15 = sadd.s32 1, %s1003_s12   ;;  %s25_s16 = sadd.s32 1, %s999_s11 }
   0x7   : > { %s22_s17 = ssub.s32 %s1003_s12, %s1053_s15  ;;  %p32_p0 = scmp.ne.s32.totalorder %s999_s11, %s995_s10 }
   0x8   : > { %p23_p1 = scmp.eq.s32.totalorder %s22_s17, 0  ;;  %p33_p2 = scmp.eq.s32.totalorder %s1003_s12, 0 }
   0x9   : > { %p38_p3 = scmp.ne.s32.totalorder %s995_s10, %s991_s9  ;;  %p39_p4 = scmp.eq.s32.totalorder %s1049_s13, 0 }
   0xa   : > { %s1065_s18 = scalar_select %p23_p1, %s999_s11, %s25_s16  }
   0xb   : > { %p1067_p5 = por %p33_p2, %p32_p0  ;;  %p1071_p6 = por %p39_p4, %p38_p3 }
   0xc   : > { %p83_p7 = scmp.eq.s32.totalorder %s1049_s13, 1  ;;  %p89_p8 = scmp.eq.s32.totalorder %s793_s14, 1 }
   0xd   : > { %p825_p10 = scmp.lt.s32.totalorder %s1003_s12, 2  ;;  %s112_s23 = sand.u32 1, %s999_s11  }
   0xe   : > { %p1078_p11 = por %p83_p7, %p32_p0  ;;  %p1082_p12 = por %p89_p8, %p38_p3 }
   0xf   : > { %s807_s24 = sshll.u32 %s1003_s12, 5  ;;  %s796_s25 = sshll.u32 %s112_s23, 5 }
  0x10   : > { %s121_s28 = scalar_lea.hbm %s1354_s0, %s807_s24  ;;  %s116_s30 = scalar_lea.vmem [#allocation2], %s796_s25 }
  0x11   : > { %s122_s29 = sshll.u32 %s121_s28, 4  ;;  %s124_s3 = sshll.u32 %s116_s30, 4  ;;  %s123_s29 = int_to_ptr.hbm [resolvable:$true] %s122_s29  ;;  %s125_s3 = int_to_ptr.vmem [resolvable:$true] %s124_s3 }
  0x12   : > { %p1093_p13 = pnand %p825_p10, %p1067_p5  ;;  %p799_p0 = scmp.ge.s32.totalorder %s1003_s12, 1 }
  0x13   : > { %p132_p1 = scmp.lt.s32.totalorder %s1003_s12, 3  ;;  %s113_s5 = scalar_lea.sflag [#allocation3], %s112_s23 }
  0x14   : > { %s907_s6 = sshra.s32 %s123_s29, 4  ;;  %p911_p3 = pneg %p1093_p13  ;;  %s908_s6 = int_to_ptr.hbm [resolvable:$true] %s907_s6 }
  0x15   : > { %s909_s7 = scalar_lea.hbm %s908_s6, 32  ;;  %s914_s16 = scalar_lea.hbm %s1354_s0, 64 }
  0x16   : > { %p910_p2 = scmp.ne.s32.totalorder %s908_s6, %s909_s7  ;;  %p915_p5 = scmp.lt.s32.totalorder %s908_s6, %s1354_s0 }
  0x17   : > { %p916_p8 = scmp.lt.s32.totalorder %s914_s16, %s909_s7 }
  0x18   : > { %p912_p4 = pnand %p911_p3, %p910_p2 }
  0x19   : > { %p917_p10 = por %p916_p8, %p915_p5 }
  0x1a   : > { %p913_p7 = pneg %p912_p4 }
  0x1c   : > { %p918_p9 = pnand %p917_p10, %p913_p7 }
  0x1e   : > { %921 = shalt.err (!%p918_p9)
}
  0x1f   : > { %s1005_s23 = smov 128   ;;  %s1006_s24 = smov 8  }
  0x20   : > { %820 = dma.hbm_to_vmem [thread:$0]  (!%p1093_p13), %s123_s29, 512, %s125_s3, %s113_s5, %s1005_s23, %s1005_s23, %s1006_s24  }
  0x21   : > { %p133_p2 = pnand %p799_p0, %p132_p1 }
  0x22   : > { %s1114_s25 = sand.u32 (!%p133_p2), 1, %s995_s10  }
  0x23   : > { %136 = sbr.rel (%p133_p2) target bundleno = 944 (0x3b0), region = 28  ;;  %s800_s26 = sshll.u32 (!%p133_p2), %s1114_s25, 5 }
  0x24   : > { %s139_s27 = scalar_lea.sflag (!%p133_p2), [#allocation3], %s1114_s25  ;;  %s142_s28 = scalar_lea.vmem (!%p133_p2), [#allocation2], %s800_s26 }
  0x28   : > { %982 = dma.done.wait (%p1071_p6), %s139_s27, 512  }
  0x29   : > { %984 = vsyncadd (%p1071_p6), %s139_s27, 4294966784  ;;  %v1124_v0 = vld [vmem:[%s142_s28 + $0x10] sm:$0xff]  ;;  %v1126_v1 = vld [vmem:[%s142_s28] sm:$0xff]  ;;  %s1007_s29 = smov 112   ;;  %s1008_s20 = smov 16   ;;  %vm258_vm0 = vcmask 1047680  }
  0x2a   : > { %178 = vrot.lane.b32.xlu0 %v1124_v0, %s1007_s29  ;;  %174 = vrot.lane.b32.xlu1 %v1126_v1, %s1007_s29  ;;  %v1132_v2 = vld [vmem:[%s142_s28 + $0x18] sm:$0xff]  ;;  %v1134_v3 = vld [vmem:[%s142_s28 + $0x8] sm:$0xff]  ;;  %s1009_s30 = smov 127   ;;  %s1010_s3 = smov 1   ;;  %vm434_vm2 = vcmask 130048   ;;  %vm699_vm3 = vcmask 64512  }
  0x2b   : > { %s1310_s8 = scalar_lea.vmem [#allocation5], %s800_s26  ;;  %s808_s14 = sshll.u32 %s1049_s13, 5 }
  0x2c   : > { %s716_s19 = scalar_lea.hbm %s1356_s2, %s808_s14  ;;  %s717_s23 = sshll.u32 %s1310_s8, 4  ;;  %s718_s23 = int_to_ptr.vmem [resolvable:$true] %s717_s23 }
  0x2d   : > { %s719_s24 = sshll.u32 %s716_s19, 4  ;;  %s705_s13 = scalar_lea.sflag [#allocation4], %s1114_s25  ;;  %s720_s24 = int_to_ptr.hbm [resolvable:$true] %s719_s24 }
  0x2e   : > { %s951_s26 = sshra.s32 %s720_s24, 4  ;;  %s952_s26 = int_to_ptr.hbm [resolvable:$true] %s951_s26 }
  0x2f   : > { %s953_s27 = scalar_lea.hbm %s952_s26, 32  ;;  %p958_p0 = scmp.lt.s32.totalorder %s952_s26, %s1356_s2 }
  0x30   : > { %p954_p6 = scmp.ne.s32.totalorder %s952_s26, %s953_s27 }
  0x32   : > { %180 = vrot.lane.b32.xlu0 %v1132_v2, %s1007_s29  ;;  %176 = vrot.lane.b32.xlu1 %v1134_v3, %s1007_s29  ;;  %p955_p9 = pnand %p954_p6, %p1078_p11 }
  0x34   : > { %p956_p13 = pneg %p955_p9 }
  0x9c   : > { %v179_v4 = vpop.permute.xlu0 %178  ;;  %v175_v6 = vpop.permute.xlu1 %174 }
  0x9d   : > { %v1141_v5 = vmax.f32 %v1124_v0, %v179_v4  ;;  %v1158_v11 = vmax.f32 %v1126_v1, %v175_v6 }
  0x9f   : > { %214 = vrot.lane.b32.xlu2 %v1141_v5, %s1008_s20  ;;  %v192_v40 = vsub.f32 %v1124_v0, %v1141_v5  ;;  %v190_v47 = vsub.f32 %v1126_v1, %v1158_v11 }
  0xa1   : > { %v196_v41 = vmul.f32 100.0, %v192_v40  ;;  %v194_v49 = vmul.f32 100.0, %v190_v47 }
  0xa3   : > { %v202_v42 = vmul.f32 1.442695, %v196_v41  ;;  %v198_v55 = vmul.f32 1.442695, %v194_v49 }
  0xa4   : > { %v181_v7 = vpop.permute.xlu0 %180  ;;  %v177_v9 = vpop.permute.xlu1 %176 }
  0xa5   : > { %v1146_v8 = vmax.f32 %v1132_v2, %v181_v7  ;;  %v1155_v10 = vmax.f32 %v1134_v3, %v177_v9 }
  0xa7   : > { %265 = vrot.lane.b32.xlu2 %v1141_v5, %s1008_s20  ;;  %216 = vrot.lane.b32.xlu0 %v1146_v8, %s1008_s20  ;;  %v193_v43 = vsub.f32 %v1132_v2, %v1146_v8 }
  0xa8   : > { %268 = vrot.lane.b32.xlu1 %v1146_v8, %s1008_s20 }
  0xa9   : > { %v197_v46 = vmul.f32 100.0, %v193_v43 }
  0xab   : > { %v204_v48 = vmul.f32 1.442695, %v197_v46 }
  0xaf   : > { %259 = vrot.lane.b32.xlu0 %v1158_v11, %s1008_s20  ;;  %210 = vrot.lane.b32.xlu2 %v1158_v11, %s1008_s20 }
  0xb0   : > { %212 = vrot.lane.b32.xlu1 %v1155_v10, %s1008_s20 }
  0xb7   : > { %262 = vrot.lane.b32.xlu2 %v1155_v10, %s1008_s20 }
  0xf9   : > { %v215_v12 = vpop.permute.xlu2 %214 }
  0xfa   : > { %v224_v13 = vsub.f32 %v1124_v0, %v215_v12  ;;  %v191_v0 = vsub.f32 %v1134_v3, %v1155_v10 }
  0xfc   : > { %v228_v14 = vmul.f32 100.0, %v224_v13 }
  0xfe   : > { %v234_v15 = vmul.f32 1.442695, %v228_v14 }
 0x100   : > { %867 = vpow2.f32 %v234_v15 }
 0x101   : > { %v266_v16 = vpop.permute.xlu2 %265 }
 0x102   : > { %v267_v17 = vsel %vm258_vm0, %v266_v16, %v1141_v5 }
 0x103   : > { %275 = vrot.lane.b32.xlu0 %v267_v17, %s1008_s20 }
 0x106   : > { %v868_v19 = vpop.eup %867 }
 0x109   : > { %v211_v18 = vpop.permute.xlu2 %210 }
 0x10a   : > { %v222_v20 = vsub.f32 %v1126_v1, %v211_v18  ;;  %v195_v1 = vmul.f32 100.0, %v191_v0 }
 0x10b   : > { %246 = vrot.lane.b32.xlu0 %v868_v19, %s1007_s29 }
 0x10c   : > { %v226_v21 = vmul.f32 100.0, %v222_v20  ;;  %v200_v6 = vmul.f32 1.442695, %v195_v1  ;;  %v432_v1 = vld [vmem:[%s1355_s1] sm:$0xff] }
 0x10e   : > { %v230_v22 = vmul.f32 1.442695, %v226_v21 }
 0x110   : > { %869 = vpow2.f32 %v230_v22 }
 0x111   : > { %v263_v29 = vpop.permute.xlu2 %262 }
 0x112   : > { %v264_v35 = vsel %vm258_vm0, %v263_v29, %v1155_v10 }
 0x116   : > { %v870_v23 = vpop.eup %869 }
 0x117   : > { %242 = vrot.lane.b32.xlu0 %v870_v23, %s1007_s29 }
 0x119   : > { %v217_v24 = vpop.permute.xlu0 %216 }
 0x11a   : > { %v225_v25 = vsub.f32 %v1132_v2, %v217_v24  ;;  %v269_v26 = vpop.permute.xlu1 %268 }
 0x11b   : > { %v270_v27 = vsel %vm258_vm0, %v269_v26, %v1146_v8 }
 0x11c   : > { %v229_v28 = vmul.f32 100.0, %v225_v25  ;;  %277 = vrot.lane.b32.xlu1 %v270_v27, %s1008_s20 }
 0x11e   : > { %v236_v30 = vmul.f32 1.442695, %v229_v28 }
 0x120   : > { %871 = vpow2.f32 %v236_v30 }
 0x121   : > { %v260_v31 = vpop.permute.xlu0 %259 }
 0x122   : > { %v213_v32 = vpop.permute.xlu1 %212  ;;  %v261_v33 = vsel %vm258_vm0, %v260_v31, %v1158_v11 }
 0x123   : > { %v223_v34 = vsub.f32 %v1134_v3, %v213_v32  ;;  %271 = vrot.lane.b32.xlu2 %v261_v33, %s1008_s20 }
 0x124   : > { %273 = vrot.lane.b32.xlu1 %v264_v35, %s1008_s20 }
 0x125   : > { %v227_v36 = vmul.f32 100.0, %v223_v34 }
 0x126   : > { %v872_v38 = vpop.eup %871 }
 0x127   : > { %v232_v37 = vmul.f32 1.442695, %v227_v36 }
 0x129   : > { %873 = vpow2.f32 %v232_v37 }
 0x12a   : > { %875 = vpow2.f32 %v202_v42 }
 0x12b   : > { %248 = vrot.lane.b32.xlu2 %v872_v38, %s1007_s29  ;;  %877 = vpow2.f32 %v204_v48 }
 0x12c   : > { %879 = vpow2.f32 %v198_v55 }
 0x12d   : > { %881 = vpow2.f32 %v200_v6  ;;  %v463_v6 = vand.u32 4294901760, %v432_v1 }
 0x12f   : > { %v874_v39 = vpop.eup %873 }
 0x130   : > { %244 = vrot.lane.b32.xlu1 %v874_v39, %s1007_s29  ;;  %v876_v50 = vpop.eup %875 }
 0x131   : > { %v878_v56 = vpop.eup %877 }
 0x132   : > { %v880_v59 = vpop.eup %879 }
 0x133   : > { %v882_v7 = vpop.eup %881 }
 0x175   : > { %v276_v44 = vpop.permute.xlu0 %275 }
 0x176   : > { %v1194_v45 = vsel %vm258_vm0, %v276_v44, %v1141_v5 }
 0x177   : > { %315 = vrot.lane.b32.xlu2 %v1194_v45, %s1009_s30 }
 0x17d   : > { %v247_v51 = vpop.permute.xlu0 %246  ;;  %v272_v52 = vpop.permute.xlu2 %271 }
 0x17e   : > { %v1200_v53 = vadd.f32 %v876_v50, %v247_v51  ;;  %v1204_v54 = vsel %vm258_vm0, %v272_v52, %v1158_v11 }
 0x17f   : > { %311 = vrot.lane.b32.xlu1 %v1204_v54, %s1009_s30 }
 0x180   : > { %289 = vrot.lane.b32.xlu2 %v1200_v53, %s1008_s20 }
 0x185   : > { %v249_v57 = vpop.permute.xlu2 %248 }
 0x186   : > { %v1210_v58 = vadd.f32 %v878_v56, %v249_v57 }
 0x188   : > { %292 = vrot.lane.b32.xlu1 %v1210_v58, %s1008_s20 }
 0x189   : > { %v243_v60 = vpop.permute.xlu0 %242 }
 0x18a   : > { %v1214_v61 = vadd.f32 %v880_v59, %v243_v60 }
 0x18c   : > { %283 = vrot.lane.b32.xlu2 %v1214_v61, %s1008_s20 }
 0x18e   : > { %v278_v62 = vpop.permute.xlu1 %277 }
 0x18f   : > { %v282_v63 = vsel %vm258_vm0, %v278_v62, %v1146_v8 }
 0x190   : > { %317 = vrot.lane.b32.xlu0 %v282_v63, %s1009_s30 }
 0x196   : > { %v274_v2 = vpop.permute.xlu1 %273 }
 0x197   : > { %v280_v4 = vsel %vm258_vm0, %v274_v2, %v1155_v10 }
 0x198   : > { %313 = vrot.lane.b32.xlu0 %v280_v4, %s1009_s30 }
 0x1a2   : > { %v245_v9 = vpop.permute.xlu1 %244 }
 0x1a3   : > { %v1226_v12 = vadd.f32 %v882_v7, %v245_v9  ;;  %v519_v9 = vsub.f32 %v432_v1, %v463_v6 }
 0x1a5   : > { %286 = vrot.lane.b32.xlu0 %v1226_v12, %s1008_s20 }
 0x1d1   : > { %v316_v13 = vpop.permute.xlu2 %315 }
 0x1d2   : > { %v1231_v14 = vmax.f32 %v1141_v5, %v316_v13 }
 0x1d4   : > { %359 = vrot.lane.b32.xlu1 %v1231_v14, %s1010_s3  ;;  %v329_v2 = vsub.f32 %v1141_v5, %v1231_v14 }
 0x1d6   : > { %v333_v13 = vmul.f32 100.0, %v329_v2 }
 0x1da   : > { %v290_v3 = vpop.permute.xlu2 %289 }
 0x1db   : > { %v291_v15 = vsel %vm258_vm0, %v290_v3, %v1200_v53 }
 0x1dc   : > { %299 = vrot.lane.b32.xlu1 %v291_v15, %s1008_s20  ;;  %v520_v15 = vand.u32 4294901760, %v519_v9 }
 0x1e6   : > { %v284_v16 = vpop.permute.xlu2 %283 }
 0x1e7   : > { %v285_v17 = vsel %vm258_vm0, %v284_v16, %v1214_v61 }
 0x1e8   : > { %295 = vrot.lane.b32.xlu1 %v285_v17, %s1008_s20  ;;  %v521_v17 = vsub.f32 %v519_v9, %v520_v15 }
 0x1f1   : > { %v312_v18 = vpop.permute.xlu1 %311 }
 0x1f2   : > { %v1241_v19 = vmax.f32 %v1158_v11, %v312_v18  ;;  %v339_v18 = vmul.f32 1.442695, %v333_v13 }
 0x1f4   : > { %355 = vrot.lane.b32.xlu0 %v1241_v19, %s1010_s3  ;;  %v327_v5 = vsub.f32 %v1158_v11, %v1241_v19 }
 0x1fa   : > { %v293_v20 = vpop.permute.xlu1 %292 }
 0x1fb   : > { %v294_v21 = vsel %vm258_vm0, %v293_v20, %v1210_v58  ;;  %v522_v20 = vand.u32 4294901760, %v521_v17 }
 0x1fc   : > { %301 = vrot.lane.b32.xlu0 %v294_v21, %s1008_s20  ;;  %v331_v21 = vmul.f32 100.0, %v327_v5 }
 0x202   : > { %v318_v22 = vpop.permute.xlu0 %317 }
 0x203   : > { %v1248_v23 = vmax.f32 %v1146_v8, %v318_v22  ;;  %v335_v22 = vmul.f32 1.442695, %v331_v21 }
 0x205   : > { %361 = vrot.lane.b32.xlu2 %v1248_v23, %s1010_s3 }
 0x20a   : > { %v314_v24 = vpop.permute.xlu0 %313 }
 0x20b   : > { %v1252_v25 = vmax.f32 %v1155_v10, %v314_v24 }
 0x20d   : > { %357 = vrot.lane.b32.xlu2 %v1252_v25, %s1010_s3 }
 0x217   : > { %v287_v26 = vpop.permute.xlu0 %286 }
 0x218   : > { %v288_v27 = vsel %vm258_vm0, %v287_v26, %v1226_v12 }
 0x219   : > { %297 = vrot.lane.b32.xlu2 %v288_v27, %s1008_s20  ;;  %s957_s20 = scalar_lea.hbm %s1356_s2, 64 }
 0x21a   : > { %p959_p1 = scmp.lt.s32.totalorder %s957_s20, %s953_s27 }
 0x21c   : > { %p960_p3 = por %p959_p1, %p958_p0 }
 0x21e   : > { %p961_p4 = pnand %p960_p3, %p956_p13 }
 0x246   : > { %v360_v28 = vpop.permute.xlu1 %359 }
 0x247   : > { %v369_v29 = vsub.f32 %v1194_v45, %v360_v28 }
 0x249   : > { %v373_v30 = vmul.f32 100.0, %v369_v29  ;;  %v423_v29 = vlaneseq }
 0x24b   : > { %v379_v31 = vmul.f32 1.442695, %v373_v30  ;;  %v330_v30 = vsub.f32 %v1146_v8, %v1248_v23 }
 0x24d   : > { %883 = vpow2.f32 %v379_v31 }
 0x24e   : > { %v300_v32 = vpop.permute.xlu1 %299 }
 0x24f   : > { %v305_v34 = vsel %vm258_vm0, %v300_v32, %v1200_v53 }
 0x253   : > { %v884_v33 = vpop.eup %883 }
 0x254   : > { %v385_v35 = vmul.f32 %v884_v33, %v305_v34  ;;  %v424_v34 = vand.u32 127, %v423_v29 }
 0x256   : > { %395 = vrot.lane.b32.xlu0 %v385_v35, %s1009_s30  ;;  %vm425_vm1 = vcmp.le.s32.totalorder %v424_v34, 14 }
 0x25a   : > { %v296_v51 = vpop.permute.xlu1 %295 }
 0x25f   : > { %v362_v36 = vpop.permute.xlu2 %361 }
 0x260   : > { %v370_v37 = vsub.f32 %v282_v63, %v362_v36  ;;  %v433_v63 = vld [vmem:[%s1355_s1 + $0x8] sm:$0xff]  ;;  %v334_v36 = vmul.f32 100.0, %v330_v30 }
 0x261   : > { %v461_v0 = vand.u32 4294901760, %v433_v63 }
 0x262   : > { %v374_v38 = vmul.f32 100.0, %v370_v37 }
 0x263   : > { %809 = vmatpush.msra.mxu2 %v461_v0  ;;  %462 = vmatpush.msra.mxu0 %v461_v0 }
 0x264   : > { %v381_v39 = vmul.f32 1.442695, %v374_v38  ;;  %v328_v38 = vsub.f32 %v1155_v10, %v1252_v25 }
 0x265   : > { %810 = vmatpush.msra.mxu2 %v463_v6  ;;  %464 = vmatpush.msra.mxu0 %v463_v6 }
 0x266   : > { %v356_v40 = vpop.permute.xlu0 %355  ;;  %885 = vpow2.f32 %v381_v39  ;;  %v341_v39 = vmul.f32 1.442695, %v334_v36 }
 0x267   : > { %v358_v41 = vpop.permute.xlu2 %357  ;;  %v367_v42 = vsub.f32 %v1204_v54, %v356_v40  ;;  %v303_v54 = vsel %vm258_vm0, %v296_v51, %v1214_v61 }
 0x268   : > { %v368_v43 = vsub.f32 %v280_v4, %v358_v41  ;;  %v513_v4 = vsub.f32 %v433_v63, %v461_v0  ;;  %v332_v41 = vmul.f32 100.0, %v328_v38 }
 0x269   : > { %v371_v44 = vmul.f32 100.0, %v367_v42 }
 0x26a   : > { %v372_v45 = vmul.f32 100.0, %v368_v43  ;;  %v514_v7 = vand.u32 4294901760, %v513_v4  ;;  %557 = vmatpush.msrb.mxu2 %v513_v4 }
 0x26b   : > { %v375_v46 = vmul.f32 1.442695, %v371_v44 }
 0x26c   : > { %v377_v47 = vmul.f32 1.442695, %v372_v45  ;;  %v886_v49 = vpop.eup %885  ;;  %v515_v3 = vsub.f32 %v513_v4, %v514_v7  ;;  %642 = vmatpush.msrb.mxu0 %v514_v7  ;;  %560 = vmatpush.msrb.mxu2 %v519_v9  ;;  %v337_v45 = vmul.f32 1.442695, %v332_v41 }
 0x26d   : > { %887 = vpow2.f32 %v375_v46 }
 0x26e   : > { %889 = vpow2.f32 %v377_v47  ;;  %v302_v48 = vpop.permute.xlu0 %301  ;;  %v516_v16 = vand.u32 4294901760, %v515_v3  ;;  %646 = vmatpush.msrb.mxu0 %v520_v15 }
 0x26f   : > { %v306_v50 = vsel %vm258_vm0, %v302_v48, %v1210_v58  ;;  %891 = vpow2.f32 %v339_v18 }
 0x270   : > { %v386_v52 = vmul.f32 %v886_v49, %v306_v50  ;;  %811 = vmatpush.msra.mxu3 %v516_v16  ;;  %517 = vmatpush.msra.mxu1 %v516_v16  ;;  %893 = vpow2.f32 %v335_v22 }
 0x272   : > { %397 = vrot.lane.b32.xlu1 %v386_v52, %s1009_s30  ;;  %812 = vmatpush.msra.mxu3 %v522_v20 }
 0x273   : > { %v888_v55 = vpop.eup %887  ;;  %v298_v56 = vpop.permute.xlu2 %297  ;;  %523 = vmatpush.msra.mxu1 %v522_v20 }
 0x274   : > { %v890_v57 = vpop.eup %889  ;;  %v304_v59 = vsel %vm258_vm0, %v298_v56, %v1226_v12  ;;  %v383_v60 = vmul.f32 %v888_v55, %v303_v54  ;;  %597 = vmatpush.msrb.mxu3 %v461_v0 }
 0x275   : > { %v384_v62 = vmul.f32 %v890_v57, %v304_v59  ;;  %679 = vmatpush.msrb.mxu1 %v461_v0  ;;  %v892_v24 = vpop.eup %891 }
 0x276   : > { %391 = vrot.lane.b32.xlu2 %v383_v60, %s1009_s30  ;;  %599 = vmatpush.msrb.mxu3 %v463_v6  ;;  %v345_v26 = vmul.f32 %v892_v24, %v1200_v53  ;;  %v894_v11 = vpop.eup %893 }
 0x277   : > { %393 = vrot.lane.b32.xlu0 %v384_v62, %s1009_s30  ;;  %681 = vmatpush.msrb.mxu1 %v463_v6  ;;  %v343_v31 = vmul.f32 %v894_v11, %v1214_v61 }
 0x2c8   : > { %v396_v27 = vpop.permute.xlu0 %395 }
 0x2c9   : > { %v405_v28 = vadd.f32 %v396_v27, %v345_v26 }
 0x2cb   : > { %895 = vlog2.f32 %v405_v28 }
 0x2d0   : > { %v392_v32 = vpop.permute.xlu2 %391 }
 0x2d1   : > { %v896_v33 = vpop.eup %895  ;;  %v403_v35 = vadd.f32 %v392_v32, %v343_v31 }
 0x2d2   : > { %v412_v37 = vmul.f32 0.6931472, %v896_v33 }
 0x2d3   : > { %897 = vlog2.f32 %v403_v35 }
 0x2d4   : > { %v417_v53 = vmul.f32 0.01, %v412_v37  ;;  %899 = vpow2.f32 %v341_v39 }
 0x2d5   : > { %901 = vpow2.f32 %v337_v45 }
 0x2d6   : > { %v421_v40 = vadd.f32 %v417_v53, %v1231_v14 }
 0x2d8   : > { %v430_v8 = vsel %vm425_vm1, %v421_v40, 0.0 }
 0x2d9   : > { %v898_v61 = vpop.eup %897  ;;  %v442_v42 = vsel %vm434_vm2, %v430_v8, 0 }
 0x2da   : > { %v408_v43 = vmul.f32 0.6931472, %v898_v61  ;;  %v1291_v44 = vand.u32 4294901760, %v442_v42  ;;  %v900_v14 = vpop.eup %899 }
 0x2db   : > { %v346_v54 = vmul.f32 %v900_v14, %v1210_v58  ;;  %v902_v59 = vpop.eup %901 }
 0x2dc   : > { %v415_v46 = vmul.f32 0.01, %v408_v43  ;;  %533 = vmatmul.f32.vlgmr.msra.gmra.mxu3 %v1291_v44  ;;  %v482_v10 = vsub.f32 %v442_v42, %v1291_v44 }
 0x2de   : > { %v419_v47 = vadd.f32 %v415_v46, %v1241_v19  ;;  %v483_v48 = vand.u32 4294901760, %v482_v10  ;;  %v344_v19 = vmul.f32 %v902_v59, %v1226_v12 }
 0x2e0   : > { %v428_v49 = vsel %vm425_vm1, %v419_v47, 0.0  ;;  %v484_v50 = vsub.f32 %v482_v10, %v483_v48 }
 0x2e1   : > { %v436_v51 = vsel %vm434_vm2, %v428_v49, 0 }
 0x2e2   : > { %v485_v52 = vand.u32 4294901760, %v484_v50  ;;  %v465_v55 = vand.u32 4294901760, %v436_v51 }
 0x2e4   : > { %486 = vmatmul.f32.vlgmr.msra.gmra.mxu2 %v485_v52  ;;  %525 = vmatmul.f32.vlgmr.msra.gmra.mxu1 %v465_v55  ;;  %v398_v56 = vpop.permute.xlu1 %397  ;;  %v466_v57 = vsub.f32 %v436_v51, %v465_v55 }
 0x2e5   : > { %v406_v60 = vadd.f32 %v398_v56, %v346_v54 }
 0x2e6   : > { %v467_v62 = vand.u32 4294901760, %v466_v57 }
 0x2e7   : > { %903 = vlog2.f32 %v406_v60 }
 0x2e8   : > { %v468_v63 = vsub.f32 %v466_v57, %v467_v62 }
 0x2e9   : > { %v394_v0 = vpop.permute.xlu0 %393 }
 0x2ea   : > { %v404_v1 = vadd.f32 %v394_v0, %v344_v19  ;;  %v469_v2 = vand.u32 4294901760, %v468_v63 }
 0x2ec   : > { %905 = vlog2.f32 %v404_v1  ;;  %470 = vmatmul.f32.vlgmr.msra.gmra.mxu0 %v469_v2 }
 0x2ed   : > { %v904_v4 = vpop.eup %903 }
 0x2ee   : > { %v414_v6 = vmul.f32 0.6931472, %v904_v4 }
 0x2f0   : > { %v418_v7 = vmul.f32 0.01, %v414_v6 }
 0x2f2   : > { %v906_v58 = vpop.eup %905  ;;  %v422_v9 = vadd.f32 %v418_v7, %v1248_v23 }
 0x2f3   : > { %v410_v13 = vmul.f32 0.6931472, %v906_v58 }
 0x2f4   : > { %v431_v3 = vsel %vm425_vm1, %v422_v9, 0.0 }
 0x2f5   : > { %v445_v15 = vsel %vm434_vm2, %v431_v3, 0  ;;  %v416_v16 = vmul.f32 0.01, %v410_v13 }
 0x2f6   : > { %v489_v17 = vand.u32 4294901760, %v445_v15 }
 0x2f7   : > { %v420_v12 = vadd.f32 %v416_v16, %v1252_v25 }
 0x2f8   : > { %537 = vmatmul.f32.gmra.mxu3 %v489_v17  ;;  %v490_v18 = vsub.f32 %v445_v15, %v489_v17 }
 0x2f9   : > { %v429_v5 = vsel %vm425_vm1, %v420_v12, 0.0 }
 0x2fa   : > { %v439_v20 = vsel %vm434_vm2, %v429_v5, 0  ;;  %v491_v21 = vand.u32 4294901760, %v490_v18 }
 0x2fb   : > { %v473_v22 = vand.u32 4294901760, %v439_v20 }
 0x2fc   : > { %v492_v24 = vsub.f32 %v490_v18, %v491_v21 }
 0x2fd   : > { %529 = vmatmul.f32.gmra.mxu1 %v473_v22  ;;  %v474_v23 = vsub.f32 %v439_v20, %v473_v22 }
 0x2fe   : > { %v493_v26 = vand.u32 4294901760, %v492_v24 }
 0x2ff   : > { %v475_v27 = vand.u32 4294901760, %v474_v23 }
 0x300   : > { %494 = vmatmul.f32.gmra.mxu2 %v493_v26  ;;  %603 = vmatmul.f32.vlgmr.msrb.gmra.mxu3 %v467_v62 }
 0x301   : > { %v476_v28 = vsub.f32 %v474_v23, %v475_v27 }
 0x303   : > { %v477_v11 = vand.u32 4294901760, %v476_v28 }
 0x305   : > { %478 = vmatmul.f32.gmra.mxu0 %v477_v11  ;;  %683 = vmatmul.f32.vlgmr.msrb.gmra.mxu1 %v465_v55 }
 0x308   : > { %563 = vmatmul.f32.vlgmr.msrb.gmra.mxu2 %v466_v57  ;;  %609 = vmatmul.f32.gmra.mxu3 %v475_v27 }
 0x30d   : > { %648 = vmatmul.f32.vlgmr.msrb.gmra.mxu0 %v465_v55  ;;  %687 = vmatmul.f32.gmra.mxu1 %v473_v22 }
 0x310   : > { %568 = vmatmul.f32.gmra.mxu2 %v474_v23  ;;  %615 = vmatmul.f32.gmra.mxu3 %v483_v48 }
 0x315   : > { %652 = vmatmul.f32.gmra.mxu0 %v473_v22  ;;  %691 = vmatmul.f32.gmra.mxu1 %v1291_v44 }
 0x318   : > { %573 = vmatmul.f32.gmra.mxu2 %v482_v10  ;;  %621 = vmatmul.f32.gmra.mxu3 %v491_v21 }
 0x31d   : > { %656 = vmatmul.f32.gmra.mxu0 %v1291_v44  ;;  %695 = vmatmul.f32.gmra.mxu1 %v489_v17 }
 0x320   : > { %578 = vmatmul.f32.gmra.mxu2 %v490_v18 }
 0x325   : > { %660 = vmatmul.f32.gmra.mxu0 %v489_v17 }
 0x35f   : > { %v534_v25 = vpop.f32.mrf.mxu3 }
 0x361   : > { %v526_v29 = vpop.f32.mrf.mxu1 }
 0x367   : > { %v487_v31 = vpop.f32.mrf.mxu2 }
 0x368   : > { %v535_v14 = vadd.f32 %v534_v25, %v487_v31 }
 0x369   : > { %v471_v30 = vpop.f32.mrf.mxu0 }
 0x36a   : > { %v527_v37 = vadd.f32 %v526_v29, %v471_v30 }
 0x37a   : > { %v530_v33 = vpop.f32.mrf.mxu1 }
 0x37b   : > { %v538_v32 = vpop.f32.mrf.mxu3 }
 0x382   : > { %v479_v34 = vpop.f32.mrf.mxu0  ;;  %v684_v53 = vpop.f32.mrf.mxu1 }
 0x383   : > { %v495_v35 = vpop.f32.mrf.mxu2  ;;  %v604_v36 = vpop.f32.mrf.mxu3  ;;  %v531_v42 = vadd.f32 %v530_v33, %v479_v34 }
 0x384   : > { %v539_v59 = vadd.f32 %v538_v32, %v495_v35 }
 0x38a   : > { %v649_v38 = vpop.f32.mrf.mxu0  ;;  %v688_v10 = vpop.f32.mrf.mxu1 }
 0x38b   : > { %v564_v39 = vpop.f32.mrf.mxu2  ;;  %v610_v61 = vpop.f32.mrf.mxu3 }
 0x38c   : > { %v565_v40 = vadd.f32 %v564_v39, %v527_v37 }
 0x38e   : > { %v605_v41 = vadd.f32 %v604_v36, %v565_v40 }
 0x390   : > { %v650_v8 = vadd.f32 %v649_v38, %v605_v41 }
 0x392   : > { %v685_v43 = vadd.f32 %v684_v53, %v650_v8  ;;  %v653_v44 = vpop.f32.mrf.mxu0  ;;  %v692_v56 = vpop.f32.mrf.mxu1 }
 0x393   : > { %v569_v45 = vpop.f32.mrf.mxu2  ;;  %v616_v50 = vpop.f32.mrf.mxu3 }
 0x394   : > { %700 = vst.msk [vmem:[%s1310_s8] sm:$0xff] %vm699_vm3, %v685_v43  ;;  %v570_v46 = vadd.f32 %v569_v45, %v531_v42 }
 0x396   : > { %v611_v47 = vadd.f32 %v610_v61, %v570_v46 }
 0x398   : > { %v654_v48 = vadd.f32 %v653_v44, %v611_v47 }
 0x39a   : > { %v689_v49 = vadd.f32 %v688_v10, %v654_v48  ;;  %v657_v55 = vpop.f32.mrf.mxu0  ;;  %v696_v4 = vpop.f32.mrf.mxu1 }
 0x39b   : > { %v574_v51 = vpop.f32.mrf.mxu2  ;;  %v622_v63 = vpop.f32.mrf.mxu3 }
 0x39c   : > { %701 = vst.msk [vmem:[%s1310_s8 + $0x8] sm:$0xff] %vm699_vm3, %v689_v49  ;;  %v575_v52 = vadd.f32 %v574_v51, %v535_v14 }
 0x39e   : > { %v617_v54 = vadd.f32 %v616_v50, %v575_v52 }
 0x3a0   : > { %v658_v57 = vadd.f32 %v657_v55, %v617_v54 }
 0x3a2   : > { %v693_v60 = vadd.f32 %v692_v56, %v658_v57  ;;  %v661_v1 = vpop.f32.mrf.mxu0 }
 0x3a3   : > { %v579_v62 = vpop.f32.mrf.mxu2 }
 0x3a4   : > { %702 = vst.msk [vmem:[%s1310_s8 + $0x10] sm:$0xff] %vm699_vm3, %v693_v60  ;;  %v580_v19 = vadd.f32 %v579_v62, %v539_v59 }
 0x3a6   : > { %v623_v0 = vadd.f32 %v622_v63, %v580_v19 }
 0x3a8   : > { %v662_v2 = vadd.f32 %v661_v1, %v623_v0 }
 0x3aa   : > { %v697_v6 = vadd.f32 %v696_v4, %v662_v2 }
 0x3ac   : > { %703 = vst.msk [vmem:[%s1310_s8 + $0x18] sm:$0xff] %vm699_vm3, %v697_v6 }
 0x3ad   : > { %964 = shalt.err (!%p961_p4)
}
 0x3ae   : > { %s1011_s25 = smov 128   ;;  %s1012_s4 = smov 8  }
 0x3af   : > { %815 = dma.vmem_to_hbm [thread:$0]  (%p1078_p11), %s718_s23, 512, %s720_s24, %s705_s13, %s1011_s25, %s1011_s25, %s1012_s4  }
 0x3b0 PF: > { %s734_s5 = sand.u32 1, %s991_s9   ;;  %p1362_p7 = scmp.ge.s32.totalorder %s1003_s12, 2 }
 0x3b1   : > { %s735_s6 = scalar_lea.sflag [#allocation4], %s734_s5 }
 0x3b2   : > { %p822_p5 = pnand %p1362_p7, %p1082_p12 }
 0x3b4   : > { %p823_p8 = pneg %p822_p5 }
 0x3b6   : > { %986 = dma.done.wait (%p823_p8), %s735_s6, 512  }
 0x3b7   : > { %988 = vsyncadd (%p823_p8), %s735_s6, 4294966784  ;;  %p15_p10 = scmp.ge.s32.totalorder %s1053_s15, 4   ;;  %s1363_s9 = smov %s995_s10 }
 0x3b8   : > { %s1364_s10 = smov %s999_s11  ;;  %s1365_s11 = smov %s1065_s18 }
 0x3b9   : > { %s1366_s12 = smov %s1053_s15  ;;  %17 = sbr.rel (!%p15_p10) target bundleno = 5 (0x5), region = 73 }
 0x3be   :  { %741 = vsyncpa [#allocation3], 1 }
 0x3bf   :  { %743 = vsyncpa [#allocation3 + $0x1], 1 }
 0x3c0   :  { %744 = vsyncpa [#allocation4], 1 }
 0x3c1   :  { %746 = vsyncpa [#allocation4 + $0x1], 1 }

</bundles_post_ra>
